<compile_context>
chip_gen: v5e
topology: v5e:2x2
jax: 0.10.0
libtpu: 0.0.40
codegen_flags: <defaults>
</compile_context>

<pallas_src>
import functools

import jax
import jax.numpy as jnp
from jax.experimental import pallas as pl
from jax.experimental.pallas import tpu as pltpu  # noqa: F401  (TPU backend)

# Keep the one-time W_eff precompute and the reference check in true f32
# (avoid TPU's default reduced-precision f32 matmul/convolution).
jax.config.update("jax_default_matmul_precision", "highest")


# ---------------------------------------------------------------------------
# Pallas kernel: out = x @ W_eff + b_eff    (single MXU push, one bias add)
# ---------------------------------------------------------------------------
def dlinear_fused_kernel(x_ref, w_ref, b_ref, o_ref):
    o_ref[...] = (
        jnp.dot(x_ref[...], w_ref[...], preferred_element_type=jnp.float32)
        + b_ref[...]
    )


def dlinear_pallas(x, w_eff, b_eff):
    """x: (1, L) f32, w_eff: (L, O) f32, b_eff: (1, O) f32 -> (1, O) f32."""
    L = x.shape[1]
    O = w_eff.shape[1]
    # Whole-array blocks (they match the full array dims, so the (8,128)
    # divisibility rule does not apply); grid=() -> one kernel invocation.
    return pl.pallas_call(
        dlinear_fused_kernel,
        out_shape=jax.ShapeDtypeStruct((1, O), jnp.float32),
        grid=(),
        in_specs=[pl.BlockSpec((1, L), lambda: (0, 0)),
                  pl.BlockSpec((L, O), lambda: (0, 0)),
                  pl.BlockSpec((1, O), lambda: (0, 0))],
        out_specs=pl.BlockSpec((1, O), lambda: (0, 0)),
    )(x, w_eff, b_eff)


# ---------------------------------------------------------------------------
# Classical additive decomposition (approximates STL; init-time only).
# ---------------------------------------------------------------------------
def classical_decomposition(x, period=10):
    """x: (L,) f32. Returns seasonal, trend, resid each (L,).

    Linear in x: edge-padded centered 2xMA trend, centered periodic-mean
    seasonal, residual. The 2xMA filter is symmetric, so jnp.convolve's
    implicit filter reversal is a no-op (don't swap in an asymmetric filter
    without flipping it).
    """
    L = x.shape[0]
    half = period // 2
    w = jnp.concatenate([
        jnp.array([0.5], jnp.float32),
        jnp.ones((period - 1,), jnp.float32),
        jnp.array([0.5], jnp.float32),
    ]) / float(period)
    xp = jnp.pad(x, (half, half), mode="edge")
    trend = jnp.convolve(xp, w, mode="valid")          # length L

    detrended = x - trend
    phase_means = detrended.reshape(L // period, period).mean(axis=0)
    phase_means = phase_means - phase_means.mean()
    seasonal = jnp.tile(phase_means, L // period)

    resid = x - trend - seasonal
    return seasonal, trend, resid


def decomposition_matrices(input_size, period=10):
    """(L, L) matrices M_s, M_t, M_r such that component(x) == x @ M_*."""
    if input_size % period != 0:
        raise ValueError("input_size must be divisible by period")
    eye = jnp.eye(input_size, dtype=jnp.float32)
    # Row j of each result is component(e_j); by linearity component(x) = x @ M.
    m_s, m_t, m_r = jax.vmap(
        functools.partial(classical_decomposition, period=period))(eye)
    return m_s, m_t, m_r


# ---------------------------------------------------------------------------
# Model: deterministic parameter init + one-time fusion + forward
# ---------------------------------------------------------------------------
def init_params(key, input_size, output_size):
    """Mimic nn.Linear init: U(-1/sqrt(in), 1/sqrt(in)) for weight and bias."""
    bound = 1.0 / (input_size ** 0.5)
    ks = jax.random.split(key, 6)
    u = lambda k, shape: jax.random.uniform(
        k, shape, jnp.float32, minval=-bound, maxval=bound)
    return {
        # stored as (in, out) = PyTorch weight.T
        "ws": u(ks[0], (input_size, output_size)),
        "bs": u(ks[1], (1, output_size)),
        "wt": u(ks[2], (input_size, output_size)),
        "bt": u(ks[3], (1, output_size)),
        "wr": u(ks[4], (input_size, output_size)),
        "br": u(ks[5], (1, output_size)),
    }


def fuse_params(params, period=10):
    """Fold the (linear) decomposition into one effective weight and bias."""
    L = params["ws"].shape[0]
    m_s, m_t, m_r = decomposition_matrices(L, period=period)
    w_eff = m_s @ params["ws"] + m_t @ params["wt"] + m_r @ params["wr"]
    b_eff = params["bs"] + params["bt"] + params["br"]
    return w_eff, b_eff


def dlinear_stl_forward(context, w_eff, b_eff):
    """context: (L,) f32  ->  (1, 1, output_size) f32"""
    x = context.reshape(1, -1).astype(jnp.float32)
    out = dlinear_pallas(x, w_eff, b_eff)   # (1, O)
    return out.reshape(1, 1, -1)


if __name__ == "__main__":
    input_size = 40    # context length (4 periods of 10)
    output_size = 16
    period = 10

    key = jax.random.PRNGKey(0)
    k_ctx, k_params = jax.random.split(key)

    context = jax.random.normal(k_ctx, (input_size,), jnp.float32)
    params = init_params(k_params, input_size, output_size)

    # One-time (init) fusion of decomposition + three Linear layers.
    w_eff, b_eff = fuse_params(params, period=period)
    w_eff, b_eff = jax.block_until_ready((w_eff, b_eff))

    out = dlinear_stl_forward(context, w_eff, b_eff)
    out = jax.block_until_ready(out)
    assert out.shape == (1, 1, output_size)

    # Reference: explicit decomposition + three Linear layers in plain JAX.
    s, t, r = classical_decomposition(context, period=period)
    ref = (s.reshape(1, -1) @ params["ws"] + params["bs"]
           + t.reshape(1, -1) @ params["wt"] + params["bt"]
           + r.reshape(1, -1) @ params["wr"] + params["br"]).reshape(1, 1, -1)
    assert jnp.allclose(out, ref, atol=1e-4, rtol=1e-4), \
        float(jnp.max(jnp.abs(out - ref)))

    print("KERNEL_OK")
</pallas_src>

<mosaic_0001>
module attributes {stable_mosaic.version = 11 : i64} {
  func.func @dlinear_fused_kernel(%arg0: memref<1x40xf32, #tpu.memory_space<vmem>>, %arg1: memref<40x16xf32, #tpu.memory_space<vmem>>, %arg2: memref<1x16xf32, #tpu.memory_space<vmem>>, %arg3: memref<1x16xf32, #tpu.memory_space<vmem>>) attributes {dimension_semantics = [], scalar_prefetch = 0 : i64, scratch_operands = 0 : i64, tpu.core_type = #tpu.core_type<tc>} {
    %c0 = arith.constant 0 : index
    %c0_0 = arith.constant 0 : index
    %0 = vector.load %arg0[%c0, %c0_0] : memref<1x40xf32, #tpu.memory_space<vmem>>, vector<1x40xf32>
    %c0_1 = arith.constant 0 : index
    %c0_2 = arith.constant 0 : index
    %1 = vector.load %arg1[%c0_1, %c0_2] : memref<40x16xf32, #tpu.memory_space<vmem>>, vector<40x16xf32>
    %cst = arith.constant dense<0.000000e+00> : vector<1x16xf32>
    %2 = tpu.matmul %0, %1, %cst {dimension_numbers = #tpu.dot_dimension_numbers<[1], [0], [0], [1], [0, 0, 1, 1], [], []>, precision = #tpu.contract_precision<fp32>} : vector<1x40xf32>, vector<40x16xf32>, vector<1x16xf32> -> vector<1x16xf32>
    %c0_3 = arith.constant 0 : index
    %c0_4 = arith.constant 0 : index
    %3 = vector.load %arg2[%c0_3, %c0_4] : memref<1x16xf32, #tpu.memory_space<vmem>>, vector<1x16xf32>
    %4 = arith.addf %2, %3 : vector<1x16xf32>
    %c0_5 = arith.constant 0 : index
    %c0_6 = arith.constant 0 : index
    %5 = vector.load %arg3[%c0_5, %c0_6] : memref<1x16xf32, #tpu.memory_space<vmem>>, vector<1x16xf32>
    tpu.vector_store %arg3[%c0_5, %c0_6], %4 {strides = array<i32>} : memref<1x16xf32, #tpu.memory_space<vmem>>, vector<1x16xf32>,
    return
  }
}

</mosaic_0001>

<bundles_post_ra>
// kernel: tpu_custom_call.1
= control target key start
LH: loop header
LB: loop body
LE: loop exit
PB: predicated region body
PF: predicated region fallthrough
CT: control target
= control target key end

     0   :  { %vm22_vm0 = vcmask 326656   ;;  %s320_s0 = inlined_call_operand.vmem [shape: f32[1,40], index: 0, kind: input, shape index: {}]   ;;  %s321_s1 = inlined_call_operand.vmem [shape: f32[40,16], index: 1, kind: input, shape index: {}]   ;;  %s322_s2 = inlined_call_operand.vmem [shape: f32[1,16], index: 2, kind: input, shape index: {}]   ;;  %s323_s3 = inlined_call_operand.hbm [shape: f32[1,16], index: 3, kind: output, shape index: {}]  }
   0x1   :  { %v20_v0 = vld [vmem:[%s321_s1 + $0x20] sm:$0xff]  ;;  %v19_v1 = vld [vmem:[%s321_s1 + $0x18] sm:$0xff]  ;;  %v18_v2 = vld [vmem:[%s321_s1 + $0x10] sm:$0xff] }
   0x2   :  { %v37_v3 = vand.u32 4294901760, %v20_v0  ;;  %v39_v4 = vand.u32 4294901760, %v19_v1  ;;  %v299_v5 = vand.u32 4294901760, %v18_v2  ;;  %v17_v6 = vld [vmem:[%s321_s1 + $0x8] sm:$0xff]  ;;  %v16_v7 = vld [vmem:[%s321_s1] sm:$0xff] }
   0x3   :  { %v43_v8 = vand.u32 4294901760, %v17_v6  ;;  %v45_v9 = vand.u32 4294901760, %v16_v7  ;;  %v15_v10 = vld [vmem:[%s320_s0] sm:$0x1] }
   0x4   :  { %v68_v11 = vsub.f32 %v20_v0, %v37_v3  ;;  %38 = vmatpush.msra.mxu0 %v37_v3  ;;  %v74_v12 = vsub.f32 %v19_v1, %v39_v4  ;;  %146 = vmatpush.msra.mxu3 %v37_v3  ;;  %v80_v13 = vsub.f32 %v18_v2, %v299_v5  ;;  %v24_v14 = vsel %vm22_vm0, %v15_v10, 0 }
   0x5   :  { %8 = vsyncpa [#allocation3], 0  ;;  %v86_v15 = vsub.f32 %v17_v6, %v43_v8  ;;  %v92_v16 = vsub.f32 %v16_v7, %v45_v9  ;;  %v47_v17 = vand.u32 4294901760, %v24_v14  ;;  %v21_v37 = vld [vmem:[%s322_s2] sm:$0x1]  ;;  %s269_s24 = smov [#allocation2]  }
   0x6   :  { %115 = vmatpush.msra.mxu2 %v68_v11  ;;  %40 = vmatpush.msra.mxu0 %v39_v4  ;;  %v69_v18 = vand.u32 4294901760, %v68_v11  ;;  %v75_v19 = vand.u32 4294901760, %v74_v12  ;;  %v81_v20 = vand.u32 4294901760, %v80_v13  ;;  %s231_s25 = sshll.u32 %s269_s24, 4  ;;  %s233_s28 = sshll.u32 %s323_s3, 4  ;;  %vm224_vm1 = vcmask 122880   ;;  %s232_s25 = int_to_ptr.vmem [resolvable:$true] %s231_s25  ;;  %s234_s28 = int_to_ptr.hbm [resolvable:$true] %s233_s28 }
   0x7   :  { %148 = vmatpush.msra.mxu3 %v39_v4  ;;  %v87_v21 = vand.u32 4294901760, %v86_v15  ;;  %v48_v22 = vsub.f32 %v24_v14, %v47_v17  ;;  %v93_v26 = vand.u32 4294901760, %v92_v16 }
   0x8   :  { %118 = vmatpush.msra.mxu2 %v74_v12  ;;  %v70_v23 = vsub.f32 %v68_v11, %v69_v18  ;;  %42 = vmatpush.msra.mxu0 %v299_v5  ;;  %v76_v24 = vsub.f32 %v74_v12, %v75_v19  ;;  %v82_v25 = vsub.f32 %v80_v13, %v81_v20 }
   0x9   :  { %150 = vmatpush.msra.mxu3 %v299_v5  ;;  %v49_v27 = vand.u32 4294901760, %v48_v22  ;;  %v88_v30 = vsub.f32 %v86_v15, %v87_v21  ;;  %v94_v33 = vsub.f32 %v92_v16, %v93_v26 }
   0xa   :  { %v71_v28 = vand.u32 4294901760, %v70_v23  ;;  %121 = vmatpush.msra.mxu2 %v80_v13  ;;  %v77_v29 = vand.u32 4294901760, %v76_v24  ;;  %44 = vmatpush.msra.mxu0 %v43_v8  ;;  %v83_v32 = vand.u32 4294901760, %v82_v25 }
   0xb   :  { %152 = vmatpush.msra.mxu3 %v43_v8  ;;  %v50_v31 = vsub.f32 %v48_v22, %v49_v27  ;;  %v89_v35 = vand.u32 4294901760, %v88_v30  ;;  %v95_v36 = vand.u32 4294901760, %v94_v33 }
   0xc   :  { %72 = vmatpush.msra.mxu1 %v71_v28  ;;  %124 = vmatpush.msra.mxu2 %v86_v15 }
   0xd   :  { %46 = vmatpush.msra.mxu0 %v45_v9  ;;  %154 = vmatpush.msra.mxu3 %v45_v9  ;;  %v51_v34 = vand.u32 4294901760, %v50_v31 }
   0xe   :  { %78 = vmatpush.msra.mxu1 %v77_v29  ;;  %127 = vmatpush.msra.mxu2 %v92_v16 }
   0xf   :  { %130 = vmatmul.f32.vlgmr.msra.gmra.mxu2 %v48_v22  ;;  %176 = vmatpush.msrb.mxu0 %v69_v18 }
  0x10   :  { %84 = vmatpush.msra.mxu1 %v83_v32  ;;  %52 = vmatmul.f32.vlgmr.msra.gmra.mxu0 %v51_v34 }
  0x11   :  { %158 = vmatmul.f32.vlgmr.msra.gmra.mxu3 %v49_v27  ;;  %180 = vmatpush.msrb.mxu0 %v75_v19 }
  0x12   :  { %90 = vmatpush.msra.mxu1 %v89_v35 }
  0x13   :  { %184 = vmatpush.msrb.mxu0 %v81_v20 }
  0x14   :  { %96 = vmatpush.msra.mxu1 %v95_v36 }
  0x15   :  { %188 = vmatpush.msrb.mxu0 %v87_v21  ;;  %98 = vmatmul.f32.vlgmr.msra.gmra.mxu1 %v47_v17 }
  0x16   :  { %210 = vmatpush.msrb.mxu1 %v37_v3 }
  0x17   :  { %192 = vmatpush.msrb.mxu0 %v93_v26 }
  0x18   :  { %212 = vmatpush.msrb.mxu1 %v39_v4  ;;  %194 = vmatmul.f32.vlgmr.msrb.gmra.mxu0 %v47_v17 }
  0x1a   :  { %214 = vmatpush.msrb.mxu1 %v299_v5 }
  0x1c   :  { %216 = vmatpush.msrb.mxu1 %v43_v8 }
  0x1e   :  { %218 = vmatpush.msrb.mxu1 %v45_v9 }
  0x1f   :  { %220 = vmatmul.f32.vlgmr.msrb.gmra.mxu1 %v47_v17 }
  0x8d   :  { %v53_v38 = vpop.f32.mrf.mxu0 }
  0x8e   :  { %v54_v39 = vadd.f32 %v53_v38, %v21_v37 }
  0x92   :  { %v99_v40 = vpop.f32.mrf.mxu1  ;;  %v131_v41 = vpop.f32.mrf.mxu2 }
  0x93   :  { %v100_v42 = vadd.f32 %v99_v40, %v54_v39 }
  0x94   :  { %v159_v43 = vpop.f32.mrf.mxu3 }
  0x95   :  { %v132_v44 = vadd.f32 %v131_v41, %v100_v42  ;;  %v195_v45 = vpop.f32.mrf.mxu0 }
  0x97   :  { %v160_v46 = vadd.f32 %v159_v43, %v132_v44 }
  0x99   :  { %v196_v47 = vadd.f32 %v195_v45, %v160_v46 }
  0x9c   :  { %v221_v48 = vpop.f32.mrf.mxu1 }
  0x9d   :  { %v222_v49 = vadd.f32 %v221_v48, %v196_v47 }
  0x9f   :  { %225 = vst.msk [vmem:[#allocation2] sm:$0x1] %vm224_vm1, %v222_v49 }
  0xa0   :  { %236 = dma.vmem_to_hbm [thread:$0]  %s232_s25, 16, %s234_s28, [#allocation3]  }
  0xa1   :  { %267 = dma.done.wait [#allocation3], 16  }
  0xa2   :  { %268 = vsyncadd [#allocation3], 4294967280 }
  0xa3   :  { %241 = vsyncpa [#allocation3], 1 }

</bundles_post_ra>
